<compile_context>
chip_gen: v5e
topology: v5e:2x2
jax: 0.10.0
libtpu: 0.0.40
codegen_flags: <defaults>
</compile_context>

<pallas_src>
import jax
import jax.numpy as jnp
from jax.experimental import pallas as pl
from jax.experimental.pallas import tpu as pltpu

IN_FEATURES = 28 * 28                                   # 784
LAYER_DIMS = [(IN_FEATURES, 128), (128, 64), (64, 32),  # encoder
              (32, 64), (64, 128), (128, IN_FEATURES)]  # decoder
TOTAL_WEIGHT_PARAMS = sum(i * o for i, o in LAYER_DIMS)  # 221184

TM_MAX = 2048              # batch tile cap (fits v7x 64 MiB VMEM with double-buffered I/O)
MEGACORE_MIN_TILE = 256    # once B >= 2*this, force >=2 tiles so both v7x TCs are fed


def _cdiv(a, b):
    return -(-a // b)


def _round_up(x, m):
    return _cdiv(x, m) * m


# ---------------------------------------------------------------------------
# Pallas kernel: entire encoder+decoder MLP for one batch tile.
# x_ref: f32 [tm, 784]; weights bf16 [in, out]; biases f32 [1, out]; out bf16 [tm, 784].
# ---------------------------------------------------------------------------
def autoencoder_kernel(x_ref,
                       w1_ref, b1_ref, w2_ref, b2_ref, w3_ref, b3_ref,
                       w4_ref, b4_ref, w5_ref, b5_ref, w6_ref, b6_ref,
                       out_ref):
    def dense_relu(h_bf16, w_ref, b_ref):
        acc = jnp.dot(h_bf16, w_ref[...], preferred_element_type=jnp.float32)  # MXU, f32 acc
        acc = jnp.maximum(acc + b_ref[...], 0.0)                               # f32 bias + ReLU (VPU)
        return acc.astype(jnp.bfloat16)                                        # bf16 for next MXU input

    h = x_ref[...].astype(jnp.bfloat16)    # in-kernel f32 -> bf16 cast (no wrapper round trip)
    # ---- encoder ----
    h = dense_relu(h, w1_ref, b1_ref)
    h = dense_relu(h, w2_ref, b2_ref)
    h = dense_relu(h, w3_ref, b3_ref)
    # TODO(synk): nn.Dropout(0.5) is identity in eval mode; training-mode RNG masking not emitted.
    # ---- decoder ----
    h = dense_relu(h, w4_ref, b4_ref)
    h = dense_relu(h, w5_ref, b5_ref)
    acc = jnp.dot(h, w6_ref[...], preferred_element_type=jnp.float32) + b6_ref[...]
    # sigmoid = 1 / (1 + exp(-x)): exp and approx reciprocal both stay on the EUP slot.
    sig = pl.reciprocal(1.0 + jnp.exp(-acc), approx=True)
    out_ref[...] = sig.astype(jnp.bfloat16)                                    # bf16 lane-dense-ish store


# ---------------------------------------------------------------------------
# Parameter preparation: bf16 weights [in, out], f32 biases [1, out]. No feature padding.
# ---------------------------------------------------------------------------
def prepare_params(params):
    flat = []
    for w, b in params:
        flat.append(w.astype(jnp.bfloat16))
        flat.append(b.astype(jnp.float32).reshape(1, -1))
    return flat


def _choose_tiling(B):
    n_tiles = _cdiv(B, TM_MAX)
    if B >= 2 * MEGACORE_MIN_TILE:
        n_tiles = max(n_tiles, 2)           # keep both v7x TensorCores busy
    tm = _round_up(max(_cdiv(B, n_tiles), 8), 8)
    return n_tiles, tm, n_tiles * tm


# ---------------------------------------------------------------------------
# Wrapper: batch-tiled grid, resident weights, minimal batch padding, bf16 kernel output.
# ---------------------------------------------------------------------------
@jax.jit
def autoencoder_forward(x, flat_params):
    """x: [B, 784] float32 -> [B, 784] float32 (kernel emits bf16, cast after)."""
    B = x.shape[0]
    n_tiles, tm, b_pad = _choose_tiling(B)

    x_in = x if b_pad == B else jnp.pad(x, ((0, b_pad - B), (0, 0)))

    weight_bytes = sum(int(p.size) * p.dtype.itemsize for p in flat_params)
    cost = pl.CostEstimate(
        flops=2 * TOTAL_WEIGHT_PARAMS * b_pad,
        transcendentals=b_pad * IN_FEATURES,                           # sigmoid
        bytes_accessed=weight_bytes
        + b_pad * IN_FEATURES * 4                                      # f32 input
        + b_pad * IN_FEATURES * 2,                                     # bf16 output
    )

    # x/out tiled over batch; weights/biases resident (constant block index -> fetched once).
    in_specs = [pl.BlockSpec((tm, IN_FEATURES), lambda i: (i, 0))]
    for p in flat_params:
        in_specs.append(pl.BlockSpec(p.shape, lambda i: (0, 0)))

    out = pl.pallas_call(
        autoencoder_kernel,
        out_shape=jax.ShapeDtypeStruct((b_pad, IN_FEATURES), jnp.bfloat16),
        grid=(n_tiles,),
        in_specs=in_specs,
        out_specs=pl.BlockSpec((tm, IN_FEATURES), lambda i: (i, 0)),
        compiler_params=pltpu.CompilerParams(
            dimension_semantics=("parallel",),      # megacore: split batch tiles across TCs
            vmem_limit_bytes=48 * 1024 * 1024,
        ),
        cost_estimate=cost,
    )(x_in, *flat_params)

    if b_pad != B:
        out = out[:B]
    return out.astype(jnp.float32)


# ---------------------------------------------------------------------------
# Deterministic parameter init (PyTorch-style U(-1/sqrt(fan_in), 1/sqrt(fan_in)))
# ---------------------------------------------------------------------------
def init_params(key):
    params = []
    for (fan_in, fan_out) in LAYER_DIMS:
        key, kw, kb = jax.random.split(key, 3)
        bound = 1.0 / jnp.sqrt(jnp.float32(fan_in))
        w = jax.random.uniform(kw, (fan_in, fan_out), jnp.float32, -bound, bound)
        b = jax.random.uniform(kb, (1, fan_out), jnp.float32, -bound, bound)
        params.append((w, b))
    return params


def reference_forward_f32(x, params):
    h = x
    for i, (w, b) in enumerate(params):
        h = h @ w + b
        h = jnp.maximum(h, 0.0) if i < 5 else jax.nn.sigmoid(h)
    return h


def reference_forward_bf16(x, params):
    # Matches the kernel's mixed-precision recipe (bf16 matmul inputs, f32 accumulate).
    h = x.astype(jnp.bfloat16)
    for i, (w, b) in enumerate(params):
        acc = jnp.dot(h, w.astype(jnp.bfloat16),
                      preferred_element_type=jnp.float32) + b.astype(jnp.float32)
        if i < 5:
            h = jnp.maximum(acc, 0.0).astype(jnp.bfloat16)
        else:
            h = jax.nn.sigmoid(acc)
    return h


if __name__ == "__main__":
    key = jax.random.PRNGKey(0)
    key, kx1, kx2 = jax.random.split(key, 3)

    params = init_params(key)
    flat_params = prepare_params(params)

    ok = True
    for kx, B in ((kx1, 8), (kx2, 33)):              # 33 exercises batch padding / slice-back
        x = jax.random.normal(kx, (B, IN_FEATURES), jnp.float32)
        out = jax.block_until_ready(autoencoder_forward(x, flat_params))
        assert out.shape == (B, IN_FEATURES)

        ref_mixed = reference_forward_bf16(x, params)
        ref_f32 = reference_forward_f32(x, params)
        # bf16 output + approx reciprocal on sigmoid in [0,1]: well within 2e-2 of mixed ref.
        ok &= bool(jnp.allclose(out, ref_mixed, atol=2e-2, rtol=2e-2))
        ok &= bool(jnp.max(jnp.abs(out - ref_f32)) < 0.1)   # bf16 vs f32 reference slack

    assert ok, "mismatch vs reference"
    print("KERNEL_OK")
</pallas_src>

<mosaic_0001>
module attributes {stable_mosaic.version = 11 : i64} {
  func.func @autoencoder_kernel(%arg0: i32, %arg1: memref<8x784xf32, #tpu.memory_space<vmem>>, %arg2: memref<784x128xbf16, #tpu.memory_space<vmem>>, %arg3: memref<1x128xf32, #tpu.memory_space<vmem>>, %arg4: memref<128x64xbf16, #tpu.memory_space<vmem>>, %arg5: memref<1x64xf32, #tpu.memory_space<vmem>>, %arg6: memref<64x32xbf16, #tpu.memory_space<vmem>>, %arg7: memref<1x32xf32, #tpu.memory_space<vmem>>, %arg8: memref<32x64xbf16, #tpu.memory_space<vmem>>, %arg9: memref<1x64xf32, #tpu.memory_space<vmem>>, %arg10: memref<64x128xbf16, #tpu.memory_space<vmem>>, %arg11: memref<1x128xf32, #tpu.memory_space<vmem>>, %arg12: memref<128x784xbf16, #tpu.memory_space<vmem>>, %arg13: memref<1x784xf32, #tpu.memory_space<vmem>>, %arg14: memref<8x784xbf16, #tpu.memory_space<vmem>>) attributes {dimension_semantics = [#tpu.dimension_semantics<parallel>], iteration_bounds = array<i64: 1>, scalar_prefetch = 0 : i64, scratch_operands = 0 : i64, tpu.core_type = #tpu.core_type<tc>, window_params = [{transform_indices = @transform_0, window_bounds = array<i64: 8, 784>}, {pipeline_mode = #tpu.pipeline_mode<synchronous>, transform_indices = @transform_1, window_bounds = array<i64: 784, 128>}, {pipeline_mode = #tpu.pipeline_mode<synchronous>, transform_indices = @transform_2, window_bounds = array<i64: 1, 128>}, {pipeline_mode = #tpu.pipeline_mode<synchronous>, transform_indices = @transform_3, window_bounds = array<i64: 128, 64>}, {pipeline_mode = #tpu.pipeline_mode<synchronous>, transform_indices = @transform_4, window_bounds = array<i64: 1, 64>}, {pipeline_mode = #tpu.pipeline_mode<synchronous>, transform_indices = @transform_5, window_bounds = array<i64: 64, 32>}, {pipeline_mode = #tpu.pipeline_mode<synchronous>, transform_indices = @transform_6, window_bounds = array<i64: 1, 32>}, {pipeline_mode = #tpu.pipeline_mode<synchronous>, transform_indices = @transform_7, window_bounds = array<i64: 32, 64>}, {pipeline_mode = #tpu.pipeline_mode<synchronous>, transform_indices = @transform_8, window_bounds = array<i64: 1, 64>}, {pipeline_mode = #tpu.pipeline_mode<synchronous>, transform_indices = @transform_9, window_bounds = array<i64: 64, 128>}, {pipeline_mode = #tpu.pipeline_mode<synchronous>, transform_indices = @transform_10, window_bounds = array<i64: 1, 128>}, {pipeline_mode = #tpu.pipeline_mode<synchronous>, transform_indices = @transform_11, window_bounds = array<i64: 128, 784>}, {pipeline_mode = #tpu.pipeline_mode<synchronous>, transform_indices = @transform_12, window_bounds = array<i64: 1, 784>}, {transform_indices = @transform_13, window_bounds = array<i64: 8, 784>}]} {
    %c0 = arith.constant 0 : index
    %c0_0 = arith.constant 0 : index
    %0 = vector.load %arg1[%c0, %c0_0] : memref<8x784xf32, #tpu.memory_space<vmem>>, vector<8x784xf32>
    %1 = arith.truncf %0 : vector<8x784xf32> to vector<8x784xbf16>
    %c0_1 = arith.constant 0 : index
    %c0_2 = arith.constant 0 : index
    %2 = vector.load %arg2[%c0_1, %c0_2] : memref<784x128xbf16, #tpu.memory_space<vmem>>, vector<784x128xbf16>
    %cst = arith.constant dense<0.000000e+00> : vector<8x128xf32>
    %3 = tpu.matmul %1, %2, %cst {dimension_numbers = #tpu.dot_dimension_numbers<[1], [0], [0], [1], [0, 0, 1, 1], [], []>} : vector<8x784xbf16>, vector<784x128xbf16>, vector<8x128xf32> -> vector<8x128xf32>
    %c0_3 = arith.constant 0 : index
    %c0_4 = arith.constant 0 : index
    %4 = vector.load %arg3[%c0_3, %c0_4] : memref<1x128xf32, #tpu.memory_space<vmem>>, vector<1x128xf32>
    %5 = vector.broadcast %4 : vector<1x128xf32> to vector<8x128xf32>
    %6 = arith.addf %3, %5 : vector<8x128xf32>
    %cst_5 = arith.constant 0.000000e+00 : f32
    %7 = vector.broadcast %cst_5 : f32 to vector<8x128xf32>
    %8 = arith.maximumf %6, %7 : vector<8x128xf32>
    %9 = arith.truncf %8 : vector<8x128xf32> to vector<8x128xbf16>
    %c0_6 = arith.constant 0 : index
    %c0_7 = arith.constant 0 : index
    %10 = vector.load %arg4[%c0_6, %c0_7] : memref<128x64xbf16, #tpu.memory_space<vmem>>, vector<128x64xbf16>
    %cst_8 = arith.constant dense<0.000000e+00> : vector<8x64xf32>
    %11 = tpu.matmul %9, %10, %cst_8 {dimension_numbers = #tpu.dot_dimension_numbers<[1], [0], [0], [1], [0, 0, 1, 1], [], []>} : vector<8x128xbf16>, vector<128x64xbf16>, vector<8x64xf32> -> vector<8x64xf32>
    %c0_9 = arith.constant 0 : index
    %c0_10 = arith.constant 0 : index
    %12 = vector.load %arg5[%c0_9, %c0_10] : memref<1x64xf32, #tpu.memory_space<vmem>>, vector<1x64xf32>
    %13 = vector.broadcast %12 : vector<1x64xf32> to vector<8x64xf32>
    %14 = arith.addf %11, %13 : vector<8x64xf32>
    %cst_11 = arith.constant 0.000000e+00 : f32
    %15 = vector.broadcast %cst_11 : f32 to vector<8x64xf32>
    %16 = arith.maximumf %14, %15 : vector<8x64xf32>
    %17 = arith.truncf %16 : vector<8x64xf32> to vector<8x64xbf16>
    %c0_12 = arith.constant 0 : index
    %c0_13 = arith.constant 0 : index
    %18 = vector.load %arg6[%c0_12, %c0_13] : memref<64x32xbf16, #tpu.memory_space<vmem>>, vector<64x32xbf16>
    %cst_14 = arith.constant dense<0.000000e+00> : vector<8x32xf32>
    %19 = tpu.matmul %17, %18, %cst_14 {dimension_numbers = #tpu.dot_dimension_numbers<[1], [0], [0], [1], [0, 0, 1, 1], [], []>} : vector<8x64xbf16>, vector<64x32xbf16>, vector<8x32xf32> -> vector<8x32xf32>
    %c0_15 = arith.constant 0 : index
    %c0_16 = arith.constant 0 : index
    %20 = vector.load %arg7[%c0_15, %c0_16] : memref<1x32xf32, #tpu.memory_space<vmem>>, vector<1x32xf32>
    %21 = vector.broadcast %20 : vector<1x32xf32> to vector<8x32xf32>
    %22 = arith.addf %19, %21 : vector<8x32xf32>
    %cst_17 = arith.constant 0.000000e+00 : f32
    %23 = vector.broadcast %cst_17 : f32 to vector<8x32xf32>
    %24 = arith.maximumf %22, %23 : vector<8x32xf32>
    %25 = arith.truncf %24 : vector<8x32xf32> to vector<8x32xbf16>
    %c0_18 = arith.constant 0 : index
    %c0_19 = arith.constant 0 : index
    %26 = vector.load %arg8[%c0_18, %c0_19] : memref<32x64xbf16, #tpu.memory_space<vmem>>, vector<32x64xbf16>
    %cst_20 = arith.constant dense<0.000000e+00> : vector<8x64xf32>
    %27 = tpu.matmul %25, %26, %cst_20 {dimension_numbers = #tpu.dot_dimension_numbers<[1], [0], [0], [1], [0, 0, 1, 1], [], []>} : vector<8x32xbf16>, vector<32x64xbf16>, vector<8x64xf32> -> vector<8x64xf32>
    %c0_21 = arith.constant 0 : index
    %c0_22 = arith.constant 0 : index
    %28 = vector.load %arg9[%c0_21, %c0_22] : memref<1x64xf32, #tpu.memory_space<vmem>>, vector<1x64xf32>
    %29 = vector.broadcast %28 : vector<1x64xf32> to vector<8x64xf32>
    %30 = arith.addf %27, %29 : vector<8x64xf32>
    %cst_23 = arith.constant 0.000000e+00 : f32
    %31 = vector.broadcast %cst_23 : f32 to vector<8x64xf32>
    %32 = arith.maximumf %30, %31 : vector<8x64xf32>
    %33 = arith.truncf %32 : vector<8x64xf32> to vector<8x64xbf16>
    %c0_24 = arith.constant 0 : index
    %c0_25 = arith.constant 0 : index
    %34 = vector.load %arg10[%c0_24, %c0_25] : memref<64x128xbf16, #tpu.memory_space<vmem>>, vector<64x128xbf16>
    %cst_26 = arith.constant dense<0.000000e+00> : vector<8x128xf32>
    %35 = tpu.matmul %33, %34, %cst_26 {dimension_numbers = #tpu.dot_dimension_numbers<[1], [0], [0], [1], [0, 0, 1, 1], [], []>} : vector<8x64xbf16>, vector<64x128xbf16>, vector<8x128xf32> -> vector<8x128xf32>
    %c0_27 = arith.constant 0 : index
    %c0_28 = arith.constant 0 : index
    %36 = vector.load %arg11[%c0_27, %c0_28] : memref<1x128xf32, #tpu.memory_space<vmem>>, vector<1x128xf32>
    %37 = vector.broadcast %36 : vector<1x128xf32> to vector<8x128xf32>
    %38 = arith.addf %35, %37 : vector<8x128xf32>
    %cst_29 = arith.constant 0.000000e+00 : f32
    %39 = vector.broadcast %cst_29 : f32 to vector<8x128xf32>
    %40 = arith.maximumf %38, %39 : vector<8x128xf32>
    %41 = arith.truncf %40 : vector<8x128xf32> to vector<8x128xbf16>
    %c0_30 = arith.constant 0 : index
    %c0_31 = arith.constant 0 : index
    %42 = vector.load %arg12[%c0_30, %c0_31] : memref<128x784xbf16, #tpu.memory_space<vmem>>, vector<128x784xbf16>
    %cst_32 = arith.constant dense<0.000000e+00> : vector<8x784xf32>
    %43 = tpu.matmul %41, %42, %cst_32 {dimension_numbers = #tpu.dot_dimension_numbers<[1], [0], [0], [1], [0, 0, 1, 1], [], []>} : vector<8x128xbf16>, vector<128x784xbf16>, vector<8x784xf32> -> vector<8x784xf32>
    %c0_33 = arith.constant 0 : index
    %c0_34 = arith.constant 0 : index
    %44 = vector.load %arg13[%c0_33, %c0_34] : memref<1x784xf32, #tpu.memory_space<vmem>>, vector<1x784xf32>
    %45 = vector.broadcast %44 : vector<1x784xf32> to vector<8x784xf32>
    %46 = arith.addf %43, %45 : vector<8x784xf32>
    %cst_35 = arith.constant 0.000000e+00 : f32
    %47 = vector.broadcast %cst_35 : f32 to vector<8x784xf32>
    %48 = arith.subf %47, %46 : vector<8x784xf32>
    %49 = math.exp %48 : vector<8x784xf32>
    %cst_36 = arith.constant 1.000000e+00 : f32
    %50 = vector.broadcast %cst_36 : f32 to vector<8x784xf32>
    %51 = arith.addf %50, %49 : vector<8x784xf32>
    %52 = tpu.reciprocal %51 {approx = true} : vector<8x784xf32> -> vector<8x784xf32>
    %53 = arith.truncf %52 : vector<8x784xf32> to vector<8x784xbf16>
    %c0_37 = arith.constant 0 : index
    %c0_38 = arith.constant 0 : index
    %54 = vector.load %arg14[%c0_37, %c0_38] : memref<8x784xbf16, #tpu.memory_space<vmem>>, vector<8x784xbf16>
    tpu.vector_store %arg14[%c0_37, %c0_38], %53 {strides = array<i32>} : memref<8x784xbf16, #tpu.memory_space<vmem>>, vector<8x784xbf16>,
    return
  }
  func.func @transform_0(%arg0: i32) -> (i32, i32) {
    %c0_i32 = arith.constant 0 : i32
    %c0_i32_0 = arith.constant 0 : i32
    return %arg0, %c0_i32 : i32, i32
  }
  func.func @transform_1(%arg0: i32) -> (i32, i32) {
    %c0_i32 = arith.constant 0 : i32
    %c0_i32_0 = arith.constant 0 : i32
    %c0_i32_1 = arith.constant 0 : i32
    return %c0_i32, %c0_i32_0 : i32, i32
  }
  func.func @transform_2(%arg0: i32) -> (i32, i32) {
    %c0_i32 = arith.constant 0 : i32
    %c0_i32_0 = arith.constant 0 : i32
    %c0_i32_1 = arith.constant 0 : i32
    return %c0_i32, %c0_i32_0 : i32, i32
  }
  func.func @transform_3(%arg0: i32) -> (i32, i32) {
    %c0_i32 = arith.constant 0 : i32
    %c0_i32_0 = arith.constant 0 : i32
    %c0_i32_1 = arith.constant 0 : i32
    return %c0_i32, %c0_i32_0 : i32, i32
  }
  func.func @transform_4(%arg0: i32) -> (i32, i32) {
    %c0_i32 = arith.constant 0 : i32
    %c0_i32_0 = arith.constant 0 : i32
    %c0_i32_1 = arith.constant 0 : i32
    return %c0_i32, %c0_i32_0 : i32, i32
  }
  func.func @transform_5(%arg0: i32) -> (i32, i32) {
    %c0_i32 = arith.constant 0 : i32
    %c0_i32_0 = arith.constant 0 : i32
    %c0_i32_1 = arith.constant 0 : i32
    return %c0_i32, %c0_i32_0 : i32, i32
  }
  func.func @transform_6(%arg0: i32) -> (i32, i32) {
    %c0_i32 = arith.constant 0 : i32
    %c0_i32_0 = arith.constant 0 : i32
    %c0_i32_1 = arith.constant 0 : i32
    return %c0_i32, %c0_i32_0 : i32, i32
  }
  func.func @transform_7(%arg0: i32) -> (i32, i32) {
    %c0_i32 = arith.constant 0 : i32
    %c0_i32_0 = arith.constant 0 : i32
    %c0_i32_1 = arith.constant 0 : i32
    return %c0_i32, %c0_i32_0 : i32, i32
  }
  func.func @transform_8(%arg0: i32) -> (i32, i32) {
    %c0_i32 = arith.constant 0 : i32
    %c0_i32_0 = arith.constant 0 : i32
    %c0_i32_1 = arith.constant 0 : i32
    return %c0_i32, %c0_i32_0 : i32, i32
  }
  func.func @transform_9(%arg0: i32) -> (i32, i32) {
    %c0_i32 = arith.constant 0 : i32
    %c0_i32_0 = arith.constant 0 : i32
    %c0_i32_1 = arith.constant 0 : i32
    return %c0_i32, %c0_i32_0 : i32, i32
  }
  func.func @transform_10(%arg0: i32) -> (i32, i32) {
    %c0_i32 = arith.constant 0 : i32
    %c0_i32_0 = arith.constant 0 : i32
    %c0_i32_1 = arith.constant 0 : i32
    return %c0_i32, %c0_i32_0 : i32, i32
  }
  func.func @transform_11(%arg0: i32) -> (i32, i32) {
    %c0_i32 = arith.constant 0 : i32
    %c0_i32_0 = arith.constant 0 : i32
    %c0_i32_1 = arith.constant 0 : i32
    return %c0_i32, %c0_i32_0 : i32, i32
  }
  func.func @transform_12(%arg0: i32) -> (i32, i32) {
    %c0_i32 = arith.constant 0 : i32
    %c0_i32_0 = arith.constant 0 : i32
    %c0_i32_1 = arith.constant 0 : i32
    return %c0_i32, %c0_i32_0 : i32, i32
  }
  func.func @transform_13(%arg0: i32) -> (i32, i32) {
    %c0_i32 = arith.constant 0 : i32
    %c0_i32_0 = arith.constant 0 : i32
    return %arg0, %c0_i32 : i32, i32
  }
}

</mosaic_0001>

<bundles_post_ra>
// kernel: autoencoder_forward.1
= control target key start
LH: loop header
LB: loop body
LE: loop exit
PB: predicated region body
PF: predicated region fallthrough
CT: control target
= control target key end

     0   :  { %vm455_vm0 = vcmask 130048   ;;  %vm671_vm1 = vcmask 523264   ;;  %vm710_vm2 = vcmask 261120   ;;  %vm1284_vm3 = vcmask 125952   ;;  %s2602_s1 = inlined_call_operand.vmem [shape: bf16[784,128], index: 1, kind: input, shape index: {}]   ;;  %s2603_s2 = inlined_call_operand.vmem [shape: f32[1,128], index: 2, kind: input, shape index: {}]   ;;  %s2604_s0 = inlined_call_operand.vmem [shape: f32[8,784], index: 0, kind: input, shape index: {}]   ;;  %s2605_s4 = inlined_call_operand.vmem [shape: f32[1,64], index: 4, kind: input, shape index: {}]   ;;  %s2606_s3 = inlined_call_operand.vmem [shape: bf16[128,64], index: 3, kind: input, shape index: {}]   ;;  %s2607_s5 = inlined_call_operand.vmem [shape: bf16[64,32], index: 5, kind: input, shape index: {}]   ;;  %s2608_s6 = inlined_call_operand.vmem [shape: f32[1,32], index: 6, kind: input, shape index: {}]   ;;  %s2609_s7 = inlined_call_operand.vmem [shape: bf16[32,64], index: 7, kind: input, shape index: {}]   ;;  %s2610_s8 = inlined_call_operand.vmem [shape: f32[1,64], index: 8, kind: input, shape index: {}]   ;;  %s2611_s9 = inlined_call_operand.vmem [shape: bf16[64,128], index: 9, kind: input, shape index: {}]   ;;  %s2612_s10 = inlined_call_operand.vmem [shape: f32[1,128], index: 10, kind: input, shape index: {}]   ;;  %s2613_s11 = inlined_call_operand.vmem [shape: bf16[128,784], index: 11, kind: input, shape index: {}]   ;;  %s2614_s12 = inlined_call_operand.vmem [shape: f32[1,784], index: 12, kind: input, shape index: {}]   ;;  %s2615_s13 = inlined_call_operand.vmem [shape: bf16[8,784], index: 13, kind: output, shape index: {}]  }
   0x1   :  { %v1793_v0 = vld [vmem:[%s2602_s1 + $0x38] sm:$0xff]  ;;  %v1792_v3 = vld [vmem:[%s2602_s1 + $0x30] sm:$0xff]  ;;  %v1791_v8 = vld [vmem:[%s2602_s1 + $0x28] sm:$0xff] }
   0x2   :  { %v1801_v1 = vld [vmem:[%s2602_s1 + $0x78] sm:$0xff]  ;;  %459 = vmatpush.bf16.msra.mxu0 %v1793_v0  ;;  %v1800_v4 = vld [vmem:[%s2602_s1 + $0x70] sm:$0xff]  ;;  %v1799_v9 = vld [vmem:[%s2602_s1 + $0x68] sm:$0xff] }
   0x3   :  { %v1809_v2 = vld [vmem:[%s2602_s1 + $0xb8] sm:$0xff]  ;;  %472 = vmatpush.bf16.msra.mxu1 %v1801_v1  ;;  %v1808_v5 = vld [vmem:[%s2602_s1 + $0xb0] sm:$0xff]  ;;  %v1807_v10 = vld [vmem:[%s2602_s1 + $0xa8] sm:$0xff] }
   0x4   :  { %485 = vmatpush.bf16.msra.mxu2 %v1809_v2  ;;  %v1817_v6 = vld [vmem:[%s2602_s1 + $0xf8] sm:$0xff]  ;;  %v1816_v7 = vld [vmem:[%s2602_s1 + $0xf0] sm:$0xff]  ;;  %v1815_v11 = vld [vmem:[%s2602_s1 + $0xe8] sm:$0xff] }
   0x5   :  { %498 = vmatpush.bf16.msra.mxu3 %v1817_v6  ;;  %v1790_v12 = vld [vmem:[%s2602_s1 + $0x20] sm:$0xff]  ;;  %v1789_v16 = vld [vmem:[%s2602_s1 + $0x18] sm:$0xff]  ;;  %v1788_v20 = vld [vmem:[%s2602_s1 + $0x10] sm:$0xff] }
   0x6   :  { %460 = vmatpush.bf16.msra.mxu0 %v1792_v3  ;;  %v1798_v13 = vld [vmem:[%s2602_s1 + $0x60] sm:$0xff]  ;;  %v1797_v17 = vld [vmem:[%s2602_s1 + $0x58] sm:$0xff]  ;;  %v1796_v21 = vld [vmem:[%s2602_s1 + $0x50] sm:$0xff] }
   0x7   :  { %473 = vmatpush.bf16.msra.mxu1 %v1800_v4  ;;  %v1806_v14 = vld [vmem:[%s2602_s1 + $0xa0] sm:$0xff]  ;;  %v1805_v18 = vld [vmem:[%s2602_s1 + $0x98] sm:$0xff]  ;;  %v1804_v22 = vld [vmem:[%s2602_s1 + $0x90] sm:$0xff] }
   0x8   :  { %486 = vmatpush.bf16.msra.mxu2 %v1808_v5  ;;  %v1814_v15 = vld [vmem:[%s2602_s1 + $0xe0] sm:$0xff]  ;;  %v1813_v19 = vld [vmem:[%s2602_s1 + $0xd8] sm:$0xff]  ;;  %v1812_v23 = vld [vmem:[%s2602_s1 + $0xd0] sm:$0xff] }
   0x9   :  { %499 = vmatpush.bf16.msra.mxu3 %v1816_v7  ;;  %v1787_v24 = vld [vmem:[%s2602_s1 + $0x8] sm:$0xff]  ;;  %v1786_v27 = vld [vmem:[%s2602_s1] sm:$0xff]  ;;  %v1825_v32 = vld [vmem:[%s2602_s1 + $0x138] sm:$0xff] }
   0xa   :  { %461 = vmatpush.bf16.msra.mxu0 %v1791_v8  ;;  %v1795_v25 = vld [vmem:[%s2602_s1 + $0x48] sm:$0xff]  ;;  %v1794_v29 = vld [vmem:[%s2602_s1 + $0x40] sm:$0xff]  ;;  %v1833_v33 = vld [vmem:[%s2602_s1 + $0x178] sm:$0xff] }
   0xb   :  { %474 = vmatpush.bf16.msra.mxu1 %v1799_v9  ;;  %v1803_v26 = vld [vmem:[%s2602_s1 + $0x88] sm:$0xff]  ;;  %v45_v30 = vld [vmem:[%s2604_s0] sm:$0xff]  ;;  %v47_v35 = vld [vmem:[%s2604_s0 + $0x10] sm:$0xff] }
   0xc   :  { %487 = vmatpush.bf16.msra.mxu2 %v1807_v10  ;;  %v1811_v28 = vld [vmem:[%s2602_s1 + $0xc8] sm:$0xff]  ;;  %v1802_v34 = vld [vmem:[%s2602_s1 + $0x80] sm:$0xff]  ;;  %v52_v36 = vpack.c.bf16 %v45_v30, %v45_v30  ;;  %v48_v40 = vld [vmem:[%s2604_s0 + $0x18] sm:$0xff]  ;;  %v54_v43 = vpack.c.bf16 %v47_v35, %v47_v35 }
   0xd   :  { %500 = vmatpush.bf16.msra.mxu3 %v1815_v11  ;;  %v46_v31 = vld [vmem:[%s2604_s0 + $0x8] sm:$0xff]  ;;  %v1810_v38 = vld [vmem:[%s2602_s1 + $0xc0] sm:$0xff]  ;;  %v1824_v41 = vld [vmem:[%s2602_s1 + $0x130] sm:$0xff]  ;;  %v55_v44 = vpack.c.bf16 %v48_v40, %v48_v40 }
   0xe   :  { %462 = vmatpush.bf16.msra.mxu0 %v1790_v12  ;;  %v53_v37 = vpack.c.bf16 %v46_v31, %v46_v31  ;;  %v1834_v39 = vld [vmem:[%s2602_s1 + $0x180] sm:$0xff]  ;;  %v1832_v42 = vld [vmem:[%s2602_s1 + $0x170] sm:$0xff]  ;;  %v1823_v45 = vld [vmem:[%s2602_s1 + $0x128] sm:$0xff] }
   0xf   :  { %475 = vmatpush.bf16.msra.mxu1 %v1798_v13  ;;  %v1831_v46 = vld [vmem:[%s2602_s1 + $0x168] sm:$0xff]  ;;  %v1822_v47 = vld [vmem:[%s2602_s1 + $0x120] sm:$0xff]  ;;  %v1821_v49 = vld [vmem:[%s2602_s1 + $0x118] sm:$0xff] }
  0x10   :  { %488 = vmatpush.bf16.msra.mxu2 %v1806_v14  ;;  %v1830_v48 = vld [vmem:[%s2602_s1 + $0x160] sm:$0xff]  ;;  %v1829_v50 = vld [vmem:[%s2602_s1 + $0x158] sm:$0xff]  ;;  %v51_v51 = vld [vmem:[%s2604_s0 + $0x30] sm:$0xff] }
  0x11   :  { %501 = vmatpush.bf16.msra.mxu3 %v1814_v15  ;;  %v1820_v52 = vld [vmem:[%s2602_s1 + $0x110] sm:$0xff]  ;;  %v58_v54 = vpack.c.bf16 %v51_v51, %v51_v51  ;;  %v1819_v55 = vld [vmem:[%s2602_s1 + $0x108] sm:$0xff]  ;;  %v1818_v57 = vld [vmem:[%s2602_s1 + $0x100] sm:$0xff] }
  0x12   :  { %463 = vmatpush.bf16.msra.mxu0 %v1789_v16  ;;  %v1828_v53 = vld [vmem:[%s2602_s1 + $0x150] sm:$0xff]  ;;  %v1827_v56 = vld [vmem:[%s2602_s1 + $0x148] sm:$0xff]  ;;  %v1826_v58 = vld [vmem:[%s2602_s1 + $0x140] sm:$0xff] }
  0x13   :  { %476 = vmatpush.bf16.msra.mxu1 %v1797_v17  ;;  %v49_v59 = vld [vmem:[%s2604_s0 + $0x20] sm:$0xff]  ;;  %v50_v60 = vld [vmem:[%s2604_s0 + $0x28] sm:$0xff]  ;;  %v1842_v63 = vld [vmem:[%s2606_s3 + $0x38] sm:$0xff] }
  0x14   :  { %489 = vmatpush.bf16.msra.mxu2 %v1805_v18  ;;  %v56_v61 = vpack.c.bf16 %v49_v59, %v49_v59  ;;  %v57_v62 = vpack.c.bf16 %v50_v60, %v50_v60  ;;  %v1841_v0 = vld [vmem:[%s2606_s3 + $0x30] sm:$0xff]  ;;  %v1840_v1 = vld [vmem:[%s2606_s3 + $0x28] sm:$0xff]  ;;  %v1839_v2 = vld [vmem:[%s2606_s3 + $0x20] sm:$0xff] }
  0x15   :  { %502 = vmatpush.bf16.msra.mxu3 %v1813_v19  ;;  %v1838_v3 = vld [vmem:[%s2606_s3 + $0x18] sm:$0xff]  ;;  %v1837_v4 = vld [vmem:[%s2606_s3 + $0x10] sm:$0xff]  ;;  %v1836_v5 = vld [vmem:[%s2606_s3 + $0x8] sm:$0xff] }
  0x16   :  { %464 = vmatpush.bf16.msra.mxu0 %v1788_v20  ;;  %v1835_v8 = vld [vmem:[%s2606_s3] sm:$0xff]  ;;  %v1846_v11 = vld [vmem:[%s2607_s5 + $0x18] sm:$0xff]  ;;  %v1845_v14 = vld [vmem:[%s2607_s5 + $0x10] sm:$0xff] }
  0x17   :  { %477 = vmatpush.bf16.msra.mxu1 %v1796_v21  ;;  %v1909_v15 = vld [vmem:[%s2603_s2] ss:$0 sm:$0xff]  ;;  %v1844_v16 = vld [vmem:[%s2607_s5 + $0x8] sm:$0xff] }
  0x18   :  { %490 = vmatpush.bf16.msra.mxu2 %v1804_v22  ;;  %v1848_v35 = vld [vmem:[%s2609_s7 + $0x8] sm:$0xff] }
  0x19   :  { %503 = vmatpush.bf16.msra.mxu3 %v1812_v23  ;;  %v1906_v59 = vld [vmem:[%s2613_s11 + $0x1a8] sm:$0xf0] }
  0x1a   :  { %465 = vmatpush.bf16.msra.mxu0 %v1787_v24 }
  0x1b   :  { %478 = vmatpush.bf16.msra.mxu1 %v1795_v25 }
  0x1c   :  { %491 = vmatpush.bf16.msra.mxu2 %v1803_v26 }
  0x1d   :  { %504 = vmatpush.bf16.msra.mxu3 %v1811_v28 }
  0x1e   :  { %466 = vmatpush.bf16.msra.mxu0 %v1786_v27 }
  0x1f   :  { %479 = vmatpush.bf16.msra.mxu1 %v1794_v29 }
  0x20   :  { %492 = vmatpush.bf16.msra.mxu2 %v1802_v34  ;;  %v1843_v34 = vld [vmem:[%s2607_s5] sm:$0xff] }
  0x21   :  { %467 = vmatmul.bf16.vlgmr.msra.gmra.mxu0 %v52_v36  ;;  %505 = vmatpush.bf16.msra.mxu3 %v1810_v38  ;;  %v1847_v36 = vld [vmem:[%s2609_s7] sm:$0xff] }
  0x22   :  { %511 = vmatpush.bf16.msrb.mxu0 %v1825_v32  ;;  %480 = vmatmul.bf16.vlgmr.msra.gmra.mxu1 %v53_v37  ;;  %v1910_v37 = vld [vmem:[%s2605_s4] ss:$0 sm:$0xff] }
  0x23   :  { %524 = vmatpush.bf16.msrb.mxu1 %v1833_v33  ;;  %493 = vmatmul.bf16.vlgmr.msra.gmra.mxu2 %v54_v43  ;;  %v1852_v43 = vld [vmem:[%s2611_s9 + $0x18] sm:$0xff] }
  0x24   :  { %544 = vmatpush.bf16.msrb.mxu2 %v1834_v39  ;;  %506 = vmatmul.bf16.vlgmr.msra.gmra.mxu3 %v55_v44  ;;  %v1851_v44 = vld [vmem:[%s2611_s9 + $0x10] sm:$0xff] }
  0x25   :  { %620 = vmatpush.bf16.msrb.mxu3 %v1842_v63  ;;  %v1898_v63 = vld [vmem:[%s2613_s11 + $0x168] sm:$0xf0] }
  0x26   :  { %512 = vmatpush.bf16.msrb.mxu0 %v1824_v41 }
  0x27   :  { %525 = vmatpush.bf16.msrb.mxu1 %v1832_v42 }
  0x28   :  { %679 = vmatpush.bf16.msra.mxu2 %v1846_v11  ;;  %v1712_v11 = vld [vmem:[%s2613_s11 + $0x120] sm:$0xf] }
  0x29   :  { %621 = vmatpush.bf16.msrb.mxu3 %v1841_v0  ;;  %v1895_v0 = vld [vmem:[%s2613_s11 + $0x154] sm:$0xf] }
  0x2a   :  { %513 = vmatpush.bf16.msrb.mxu0 %v1823_v45  ;;  %v1850_v45 = vld [vmem:[%s2611_s9 + $0x8] sm:$0xff] }
  0x2b   :  { %526 = vmatpush.bf16.msrb.mxu1 %v1831_v46  ;;  %v1911_v46 = vld [vmem:[%s2608_s6] ss:$0 sm:$0xff] }
  0x2c   :  { %680 = vmatpush.bf16.msra.mxu2 %v1845_v14  ;;  %v1676_v14 = vld [vmem:[%s2613_s11 + $0xe0] sm:$0xf] }
  0x2d   :  { %622 = vmatpush.bf16.msrb.mxu3 %v1840_v1 }
  0x2e   :  { %514 = vmatpush.bf16.msrb.mxu0 %v1822_v47 }
  0x2f   :  { %527 = vmatpush.bf16.msrb.mxu1 %v1830_v48 }
  0x30   :  { %681 = vmatpush.bf16.msra.mxu2 %v1844_v16 }
  0x31   :  { %623 = vmatpush.bf16.msrb.mxu3 %v1839_v2  ;;  %v1734_v2 = vld [vmem:[%s2613_s11 + $0x16c] sm:$0xf0] }
  0x32   :  { %515 = vmatpush.bf16.msrb.mxu0 %v1821_v49 }
  0x33   :  { %528 = vmatpush.bf16.msrb.mxu1 %v1829_v50  ;;  %1486 = vmatmul.msk.bf16.vlgmr.msrb.gmra.mxu2 %vm455_vm0, %v58_v54  ;;  %v1905_v54 = vld [vmem:[%s2613_s11 + $0x1a0] sm:$0xf0] }
  0x34   :  { %682 = vmatpush.bf16.msra.mxu2 %v1843_v34  ;;  %v1656_v34 = vld [vmem:[%s2613_s11 + $0xb0] sm:$0xf] }
  0x35   :  { %624 = vmatpush.bf16.msrb.mxu3 %v1838_v3  ;;  %v1740_v3 = vld [vmem:[%s2613_s11 + $0x158] sm:$0xf] }
  0x36   :  { %516 = vmatpush.bf16.msrb.mxu0 %v1820_v52  ;;  %v1849_v52 = vld [vmem:[%s2611_s9] sm:$0xff] }
  0x37   :  { %529 = vmatpush.bf16.msrb.mxu1 %v1828_v53  ;;  %v1760_v53 = vld [vmem:[%s2613_s11 + $0x188] sm:$0xf] }
  0x39   :  { %625 = vmatpush.bf16.msrb.mxu3 %v1837_v4  ;;  %v1899_v4 = vld [vmem:[%s2613_s11 + $0x170] sm:$0xf0] }
  0x3a   :  { %517 = vmatpush.bf16.msrb.mxu0 %v1819_v55  ;;  %v1902_v55 = vld [vmem:[%s2613_s11 + $0x18c] sm:$0xf] }
  0x3b   :  { %530 = vmatpush.bf16.msrb.mxu1 %v1827_v56  ;;  %v1761_v56 = vor.u32 %v1905_v54, %v1760_v53  ;;  %v1592_v53 = vld [vmem:[%s2613_s11 + $0x38] sm:$0xf]  ;;  %v1863_v54 = vld [vmem:[%s2613_s11 + $0x50] sm:$0xf0] }
  0x3d   :  { %626 = vmatpush.bf16.msrb.mxu3 %v1836_v5  ;;  %1151 = vmatpush.bf16.msrb.mxu2 %v1761_v56  ;;  %v1737_v5 = vor.u32 %v1895_v0, %v1734_v2  ;;  %v1593_v0 = vor.u32 %v1863_v54, %v1592_v53  ;;  %v1856_v2 = vld [vmem:[%s2613_s11 + $0x18] sm:$0xf0]  ;;  %v1692_v53 = vld [vmem:[%s2613_s11 + $0xf0] sm:$0xf] }
  0x3e   :  { %518 = vmatpush.bf16.msrb.mxu0 %v1818_v57  ;;  %v1762_v57 = vld [vmem:[%s2613_s11 + $0x1a4] sm:$0xf0] }
  0x3f   :  { %531 = vmatpush.bf16.msrb.mxu1 %v1826_v58  ;;  %v1768_v58 = vld [vmem:[%s2613_s11 + $0x190] sm:$0xf]  ;;  %v1765_v60 = vor.u32 %v1902_v55, %v1762_v57 }
  0x41   :  { %519 = vmatmul.bf16.vlgmr.msrb.gmra.mxu0 %v56_v61  ;;  %627 = vmatpush.bf16.msrb.mxu3 %v1835_v8  ;;  %v1769_v61 = vor.u32 %v1906_v59, %v1768_v58  ;;  %v1891_v8 = vld [vmem:[%s2613_s11 + $0x130] sm:$0xf0]  ;;  %v1860_v58 = vld [vmem:[%s2613_s11 + $0x3c] sm:$0xf] }
  0x42   :  { %532 = vmatmul.bf16.vlgmr.msrb.gmra.mxu1 %v57_v62  ;;  %v1732_v62 = vld [vmem:[%s2613_s11 + $0x150] sm:$0xf]  ;;  %v1875_v59 = vld [vmem:[%s2613_s11 + $0xb4] sm:$0xf] }
  0x43   :  { %720 = vmatpush.bf16.msra.mxu1 %v1848_v35  ;;  %v1733_v1 = vor.u32 %v1898_v63, %v1732_v62  ;;  %1177 = vmatpush.bf16.msra.mxu0 %v1769_v61  ;;  %v1594_v61 = vld [vmem:[%s2613_s11 + $0x54] sm:$0xf0]  ;;  %v1600_v62 = vld [vmem:[%s2613_s11 + $0x40] sm:$0xf]  ;;  %v1864_v63 = vld [vmem:[%s2613_s11 + $0x58] sm:$0xf0] }
  0x45   :  { %1164 = vmatpush.bf16.msra.mxu3 %v1765_v60  ;;  %1152 = vmatpush.bf16.msrb.mxu2 %v1733_v1  ;;  %v1658_v60 = vld [vmem:[%s2613_s11 + $0xcc] sm:$0xf0]  ;;  %v1564_v1 = vld [vmem:[%s2613_s11] sm:$0xf] }
  0x47   :  { %721 = vmatpush.bf16.msra.mxu1 %v1847_v36  ;;  %v1878_v36 = vld [vmem:[%s2613_s11 + $0xc8] sm:$0xf0] }
  0x49   :  { %1165 = vmatpush.bf16.msra.mxu3 %v1737_v5 }
  0x4b   :  { %772 = vmatpush.bf16.msrb.mxu1 %v1852_v43 }
  0x4f   :  { %773 = vmatpush.bf16.msrb.mxu1 %v1851_v44  ;;  %v1657_v44 = vor.u32 %v1878_v36, %v1656_v34  ;;  %v1901_v34 = vld [vmem:[%s2613_s11 + $0x180] sm:$0xf0] }
  0x53   :  { %774 = vmatpush.bf16.msrb.mxu1 %v1850_v45  ;;  %v1867_v45 = vld [vmem:[%s2613_s11 + $0x74] sm:$0xf] }
  0x57   :  { %775 = vmatpush.bf16.msrb.mxu1 %v1849_v52 }
  0x9e   :  { %v468_v6 = vpop.f32.mrf.mxu0 }
  0x9f   :  { %v481_v7 = vpop.f32.mrf.mxu1  ;;  %v469_v17 = vadd.f32 %v1909_v15, %v468_v6  ;;  %v1741_v6 = vor.u32 %v1899_v4, %v1740_v3  ;;  %v1884_v15 = vld [vmem:[%s2613_s11 + $0xf8] sm:$0xf0]  ;;  %v1853_v3 = vld [vmem:[%s2613_s11 + $0x4] sm:$0xf]  ;;  %v1661_v4 = vor.u32 %v1875_v59, %v1658_v60  ;;  %v1700_v60 = vld [vmem:[%s2613_s11 + $0xf8] sm:$0xf] }
  0xa1   :  { %v482_v20 = vadd.f32 %v481_v7, %v469_v17  ;;  %v1704_v7 = vld [vmem:[%s2613_s11 + $0x118] sm:$0xf]  ;;  %1178 = vmatpush.bf16.msra.mxu0 %v1741_v6  ;;  %v1597_v6 = vor.u32 %v1860_v58, %v1594_v61  ;;  %v1887_v61 = vld [vmem:[%s2613_s11 + $0x110] sm:$0xf0] }
  0xa6   :  { %v470_v9 = vpop.f32.mrf.mxu0  ;;  %v494_v12 = vpop.f32.mrf.mxu2 }
  0xa7   :  { %v483_v10 = vpop.f32.mrf.mxu1  ;;  %v507_v13 = vpop.f32.mrf.mxu3  ;;  %v495_v21 = vadd.f32 %v494_v12, %v482_v20  ;;  %v1888_v9 = vld [vmem:[%s2613_s11 + $0x11c] sm:$0xf]  ;;  %v1770_v20 = vld [vmem:[%s2613_s11 + $0x1ac] sm:$0xf0] }
  0xa8   :  { %v1706_v10 = vld [vmem:[%s2613_s11 + $0x134] sm:$0xf0]  ;;  %v1892_v12 = vld [vmem:[%s2613_s11 + $0x138] sm:$0xf0] }
  0xa9   :  { %v508_v23 = vadd.f32 %v507_v13, %v495_v21  ;;  %v1705_v13 = vor.u32 %v1891_v8, %v1704_v7  ;;  %v1709_v16 = vor.u32 %v1888_v9, %v1706_v10  ;;  %v1713_v17 = vor.u32 %v1892_v12, %v1712_v11  ;;  %v1678_v21 = vld [vmem:[%s2613_s11 + $0xfc] sm:$0xf0]  ;;  %v1572_v9 = vld [vmem:[%s2613_s11 + $0x8] sm:$0xf]  ;;  %v1857_v10 = vld [vmem:[%s2613_s11 + $0x20] sm:$0xf0] }
  0xaa   :  { %v1601_v7 = vor.u32 %v1864_v63, %v1600_v62  ;;  %v1566_v8 = vld [vmem:[%s2613_s11 + $0x1c] sm:$0xf0]  ;;  %v1776_v12 = vld [vmem:[%s2613_s11 + $0x198] sm:$0xf]  ;;  %v1701_v62 = vor.u32 %v1887_v61, %v1700_v60 }
  0xab   :  { %1153 = vmatpush.bf16.msrb.mxu2 %v1705_v13  ;;  %1166 = vmatpush.bf16.msra.mxu3 %v1709_v16  ;;  %v1907_v13 = vld [vmem:[%s2613_s11 + $0x1b0] sm:$0xf0]  ;;  %v1784_v16 = vld [vmem:[%s2613_s11 + $0x1a0] sm:$0xf]  ;;  %v1664_v63 = vld [vmem:[%s2613_s11 + $0xb8] sm:$0xf] }
  0xac   :  { %1179 = vmatpush.bf16.msra.mxu0 %v1713_v17  ;;  %v1908_v17 = vld [vmem:[%s2613_s11 + $0x1b8] sm:$0xf0] }
  0xae   :  { %v496_v18 = vpop.f32.mrf.mxu2 }
  0xaf   :  { %v509_v19 = vpop.f32.mrf.mxu3  ;;  %v1881_v18 = vld [vmem:[%s2613_s11 + $0xe4] sm:$0xf] }
  0xb0   :  { %v1903_v19 = vld [vmem:[%s2613_s11 + $0x194] sm:$0xf] }
  0xb6   :  { %v546_v22 = vpop.f32.mrf.mxu2 }
  0xbe   :  { %v520_v24 = vpop.f32.mrf.mxu0  ;;  %v548_v28 = vpop.f32.mrf.mxu2 }
  0xbf   :  { %v533_v25 = vpop.f32.mrf.mxu1  ;;  %v521_v26 = vadd.f32 %v520_v24, %v508_v23  ;;  %v1885_v23 = vld [vmem:[%s2613_s11 + $0x100] sm:$0xf0]  ;;  %v1773_v24 = vor.u32 %v1903_v19, %v1770_v20  ;;  %v1565_v19 = vor.u32 %v1856_v2, %v1564_v1  ;;  %v1868_v20 = vld [vmem:[%s2613_s11 + $0x7c] sm:$0xf] }
  0xc0   :  { %v1877_v28 = vld [vmem:[%s2613_s11 + $0xc0] sm:$0xf0]  ;;  %v1876_v1 = vld [vmem:[%s2613_s11 + $0xbc] sm:$0xf] }
  0xc1   :  { %v534_v27 = vadd.f32 %v533_v25, %v521_v26  ;;  %v1896_v25 = vld [vmem:[%s2613_s11 + $0x15c] sm:$0xf]  ;;  %v1677_v26 = vor.u32 %v1884_v15, %v1676_v14  ;;  %v1778_v15 = vld [vmem:[%s2613_s11 + $0x1b4] sm:$0xf0] }
  0xc2   :  { %v1904_v14 = vld [vmem:[%s2613_s11 + $0x19c] sm:$0xf] }
  0xc3   :  { %v547_v29 = vadd.f32 %v546_v22, %v534_v27  ;;  %v1684_v22 = vld [vmem:[%s2613_s11 + $0xe8] sm:$0xf]  ;;  %1154 = vmatpush.bf16.msrb.mxu2 %v1677_v26  ;;  %v1781_v26 = vor.u32 %v1904_v14, %v1778_v15  ;;  %v1873_v14 = vld [vmem:[%s2613_s11 + $0xa0] sm:$0xf0] }
  0xc4   :  { %v1648_v27 = vld [vmem:[%s2613_s11 + $0xa8] sm:$0xf] }
  0xc5   :  { %v550_v30 = vmax.f32 %v547_v29, 0.0  ;;  %v1742_v29 = vld [vmem:[%s2613_s11 + $0x174] sm:$0xf0] }
  0xc6   :  { %v522_v31 = vpop.f32.mrf.mxu0  ;;  %v1745_v35 = vor.u32 %v1896_v25, %v1742_v29  ;;  %v1777_v25 = vor.u32 %v1907_v13, %v1776_v12  ;;  %v1638_v12 = vld [vmem:[%s2613_s11 + $0x9c] sm:$0xf0]  ;;  %v1644_v13 = vld [vmem:[%s2613_s11 + $0x88] sm:$0xf] }
  0xc7   :  { %v535_v32 = vpop.f32.mrf.mxu1  ;;  %v551_v33 = vpack.c.bf16 %v550_v30, %v550_v30  ;;  %v1681_v30 = vor.u32 %v1881_v18, %v1678_v21  ;;  %v1685_v31 = vor.u32 %v1885_v23, %v1684_v22  ;;  %v1630_v21 = vld [vmem:[%s2613_s11 + $0x94] sm:$0xf0]  ;;  %v1569_v22 = vor.u32 %v1853_v3, %v1566_v8  ;;  %v1636_v8 = vld [vmem:[%s2613_s11 + $0x80] sm:$0xf] }
  0xc8   :  { %v1874_v32 = vld [vmem:[%s2613_s11 + $0xac] sm:$0xf]  ;;  %v1573_v23 = vor.u32 %v1857_v10, %v1572_v9  ;;  %v1633_v29 = vor.u32 %v1868_v20, %v1630_v21  ;;  %v1666_v3 = vld [vmem:[%s2613_s11 + $0xd4] sm:$0xf0]  ;;  %v1872_v9 = vld [vmem:[%s2613_s11 + $0x98] sm:$0xf0] }
  0xc9   :  { %628 = vmatmul.bf16.vlgmr.msrb.gmra.mxu3 %v551_v33  ;;  %v1650_v33 = vld [vmem:[%s2613_s11 + $0xc4] sm:$0xf0]  ;;  %1180 = vmatpush.bf16.msra.mxu0 %v1685_v31  ;;  %v1897_v31 = vld [vmem:[%s2613_s11 + $0x164] sm:$0xf]  ;;  %v1616_v21 = vld [vmem:[%s2613_s11 + $0x50] sm:$0xf] }
  0xca   :  { %1167 = vmatpush.bf16.msra.mxu3 %v1681_v30  ;;  %v1653_v43 = vor.u32 %v1874_v32, %v1650_v33  ;;  %v1900_v30 = vld [vmem:[%s2613_s11 + $0x178] sm:$0xf0]  ;;  %v1750_v32 = vld [vmem:[%s2613_s11 + $0x17c] sm:$0xf0]  ;;  %v1756_v33 = vld [vmem:[%s2613_s11 + $0x168] sm:$0xf] }
  0xcb   :  { %v1869_v10 = vld [vmem:[%s2613_s11 + $0x84] sm:$0xf]  ;;  %v1610_v20 = vld [vmem:[%s2613_s11 + $0x64] sm:$0xf0] }
  0xcc   :  { %v1641_v15 = vor.u32 %v1869_v10, %v1638_v12 }
  0xcd   :  { %1181 = vmatpush.bf16.msra.mxu0 %v1657_v44  ;;  %v1890_v44 = vld [vmem:[%s2613_s11 + $0x12c] sm:$0xf] }
  0xce   :  { %1168 = vmatpush.bf16.msra.mxu3 %v1653_v43  ;;  %v1893_v43 = vld [vmem:[%s2613_s11 + $0x140] sm:$0xf0] }
 0x14c   :  { %v629_v38 = vpop.f32.mrf.mxu3 }
 0x14d   :  { %v630_v39 = vadd.f32 %v1910_v37, %v629_v38  ;;  %v1889_v37 = vld [vmem:[%s2613_s11 + $0x124] sm:$0xf]  ;;  %v1714_v38 = vld [vmem:[%s2613_s11 + $0x13c] sm:$0xf0] }
 0x14f   :  { %v633_v40 = vmax.f32 %v630_v39, 0.0  ;;  %v1649_v39 = vor.u32 %v1877_v28, %v1648_v27  ;;  %v1748_v27 = vld [vmem:[%s2613_s11 + $0x160] sm:$0xf]  ;;  %v1785_v28 = vor.u32 %v1908_v17, %v1784_v16  ;;  %v1645_v16 = vor.u32 %v1873_v14, %v1644_v13  ;;  %v1608_v17 = vld [vmem:[%s2613_s11 + $0x48] sm:$0xf] }
 0x150   :  { %v1749_v36 = vor.u32 %v1900_v30, %v1748_v27  ;;  %v1858_v27 = vld [vmem:[%s2613_s11 + $0x28] sm:$0xf0]  ;;  %v1588_v30 = vld [vmem:[%s2613_s11 + $0x18] sm:$0xf] }
 0x151   :  { %v634_v41 = vpack.c.bf16 %v633_v40, %v633_v40  ;;  %v1620_v40 = vld [vmem:[%s2613_s11 + $0x70] sm:$0xf]  ;;  %1155 = vmatpush.bf16.msrb.mxu2 %v1649_v39  ;;  %v1861_v39 = vld [vmem:[%s2613_s11 + $0x44] sm:$0xf] }
 0x153   :  { %1535 = vmatmul.msk.bf16.vlgmr.msra.gmra.mxu2 %vm671_vm1, %v634_v41  ;;  %v1870_v41 = vld [vmem:[%s2613_s11 + $0x88] sm:$0xf0] }
 0x154   :  { %v631_v42 = vpop.f32.mrf.mxu3  ;;  %v1621_v52 = vor.u32 %v1870_v41, %v1620_v40  ;;  %v1602_v40 = vld [vmem:[%s2613_s11 + $0x5c] sm:$0xf0]  ;;  %v1720_v41 = vld [vmem:[%s2613_s11 + $0x128] sm:$0xf] }
 0x155   :  { %v1717_v42 = vor.u32 %v1889_v37, %v1714_v38  ;;  %v1753_v37 = vor.u32 %v1897_v31, %v1750_v32  ;;  %v1757_v38 = vor.u32 %v1901_v34, %v1756_v33  ;;  %v1859_v31 = vld [vmem:[%s2613_s11 + $0x30] sm:$0xf0] }
 0x156   :  { %1156 = vmatpush.bf16.msrb.mxu2 %v1621_v52  ;;  %v1574_v52 = vld [vmem:[%s2613_s11 + $0x24] sm:$0xf0]  ;;  %v1589_v34 = vor.u32 %v1859_v31, %v1588_v30 }
 0x15a   :  { %1157 = vmatpush.bf16.msrb.mxu2 %v1593_v0  ;;  %v1879_v0 = vld [vmem:[%s2613_s11 + $0xd0] sm:$0xf0] }
 0x15b   :  { %v1665_v2 = vor.u32 %v1879_v0, %v1664_v63 }
 0x15e   :  { %1158 = vmatpush.bf16.msrb.mxu2 %v1565_v19  ;;  %v1862_v19 = vld [vmem:[%s2613_s11 + $0x4c] sm:$0xf] }
 0x162   :  { %1203 = vmatpush.bf16.msra.mxu2 %v1777_v25 }
 0x166   :  { %1204 = vmatpush.bf16.msra.mxu2 %v1749_v36 }
 0x1d6   :  { %v684_v47 = vpop.f32.mrf.mxu2 }
 0x1d7   :  { %v685_v48 = vadd.f32 %v1911_v46, %v684_v47  ;;  %v1882_v46 = vld [vmem:[%s2613_s11 + $0xec] sm:$0xf]  ;;  %v1686_v47 = vld [vmem:[%s2613_s11 + $0x104] sm:$0xf0] }
 0x1d8   :  { %v1689_v55 = vor.u32 %v1882_v46, %v1686_v47  ;;  %v1721_v46 = vor.u32 %v1893_v43, %v1720_v41  ;;  %v847_v41 = vld [vmem:[%s2614_s12] sm:$0x7f] }
 0x1d9   :  { %v688_v49 = vmax.f32 %v685_v48, 0.0  ;;  %v1622_v48 = vld [vmem:[%s2613_s11 + $0x8c] sm:$0xf0]  ;;  %v852_v43 = vperm.slane %v847_v41, 3  ;;  %v853_v10 = vperm.slane %v847_v41, 4 }
 0x1da   :  { %v1625_v56 = vor.u32 %v1867_v45, %v1622_v48  ;;  %v1722_v45 = vld [vmem:[%s2613_s11 + $0x144] sm:$0xf0]  ;;  %v1728_v48 = vld [vmem:[%s2613_s11 + $0x130] sm:$0xf]  ;;  %1205 = vmatpush.bf16.msra.mxu2 %v1721_v46 }
 0x1db   :  { %v689_v50 = vpack.c.bf16 %v688_v49, %v688_v49  ;;  %v1628_v49 = vld [vmem:[%s2613_s11 + $0x78] sm:$0xf]  ;;  %v1725_v47 = vor.u32 %v1890_v44, %v1722_v45 }
 0x1dc   :  { %1169 = vmatpush.bf16.msra.mxu3 %v1625_v56  ;;  %v1883_v56 = vld [vmem:[%s2613_s11 + $0xf4] sm:$0xf] }
 0x1dd   :  { %1544 = vmatmul.msk.bf16.vlgmr.msra.gmra.mxu1 %vm710_vm2, %v689_v50  ;;  %v1871_v50 = vld [vmem:[%s2613_s11 + $0x90] sm:$0xf0] }
 0x1de   :  { %v686_v51 = vpop.f32.mrf.mxu2  ;;  %1190 = vmatpush.bf16.msra.mxu1 %v1773_v24  ;;  %v1629_v57 = vor.u32 %v1871_v50, %v1628_v49  ;;  %v1894_v49 = vld [vmem:[%s2613_s11 + $0x148] sm:$0xf0] }
 0x1df   :  { %v1912_v51 = vld [vmem:[%s2610_s8] ss:$0 sm:$0xff]  ;;  %v1729_v50 = vor.u32 %v1894_v49, %v1728_v48  ;;  %v849_v48 = vperm.slane %v847_v41, 0  ;;  %v850_v49 = vperm.slane %v847_v41, 1 }
 0x1e0   :  { %1182 = vmatpush.bf16.msra.mxu0 %v1629_v57  ;;  %1170 = vmatpush.bf16.msra.mxu3 %v1597_v6  ;;  %v1694_v57 = vld [vmem:[%s2613_s11 + $0x10c] sm:$0xf0]  ;;  %v1669_v6 = vor.u32 %v1876_v1, %v1666_v3  ;;  %v855_v3 = vperm.slane %v847_v41, 6 }
 0x1e1   :  { %v1697_v59 = vor.u32 %v1883_v56, %v1694_v57 }
 0x1e2   :  { %1191 = vmatpush.bf16.msra.mxu1 %v1745_v35 }
 0x1e4   :  { %1183 = vmatpush.bf16.msra.mxu0 %v1601_v7  ;;  %1171 = vmatpush.bf16.msra.mxu3 %v1569_v22  ;;  %v1866_v22 = vld [vmem:[%s2613_s11 + $0x68] sm:$0xf0] }
 0x1e5   :  { %v1617_v25 = vor.u32 %v1866_v22, %v1616_v21 }
 0x1e6   :  { %1192 = vmatpush.bf16.msra.mxu1 %v1717_v42  ;;  %v1605_v42 = vor.u32 %v1861_v39, %v1602_v40 }
 0x1e8   :  { %1184 = vmatpush.bf16.msra.mxu0 %v1573_v23  ;;  %1216 = vmatpush.bf16.msrb.mxu3 %v1781_v26  ;;  %v1580_v26 = vld [vmem:[%s2613_s11 + $0x10] sm:$0xf] }
 0x1e9   :  { %v1581_v32 = vor.u32 %v1858_v27, %v1580_v26 }
 0x1ea   :  { %1193 = vmatpush.bf16.msra.mxu1 %v1689_v55  ;;  %v1886_v55 = vld [vmem:[%s2613_s11 + $0x108] sm:$0xf0] }
 0x1eb   :  { %v1693_v58 = vor.u32 %v1886_v55, %v1692_v53 }
 0x1ec   :  { %1229 = vmatpush.bf16.msrb.mxu0 %v1785_v28  ;;  %1217 = vmatpush.bf16.msrb.mxu3 %v1753_v37  ;;  %v1855_v28 = vld [vmem:[%s2613_s11 + $0x14] sm:$0xf] }
 0x1ed   :  { %1206 = vmatpush.bf16.msra.mxu2 %v1693_v58 }
 0x1ee   :  { %1194 = vmatpush.bf16.msra.mxu1 %v1661_v4  ;;  %v1672_v4 = vld [vmem:[%s2613_s11 + $0xc0] sm:$0xf] }
 0x1f0   :  { %1230 = vmatpush.bf16.msrb.mxu0 %v1757_v38  ;;  %1218 = vmatpush.bf16.msrb.mxu3 %v1725_v47 }
 0x1f1   :  { %1207 = vmatpush.bf16.msra.mxu2 %v1665_v2 }
 0x1f2   :  { %1195 = vmatpush.bf16.msra.mxu1 %v1633_v29  ;;  %v1582_v29 = vld [vmem:[%s2613_s11 + $0x2c] sm:$0xf0] }
 0x1f3   :  { %v1585_v33 = vor.u32 %v1855_v28, %v1582_v29 }
 0x1f4   :  { %1231 = vmatpush.bf16.msrb.mxu0 %v1729_v50  ;;  %1219 = vmatpush.bf16.msrb.mxu3 %v1697_v59 }
 0x1f6   :  { %1196 = vmatpush.bf16.msra.mxu1 %v1605_v42  ;;  %v851_v42 = vperm.slane %v847_v41, 2 }
 0x1f8   :  { %1232 = vmatpush.bf16.msrb.mxu0 %v1701_v62  ;;  %1220 = vmatpush.bf16.msrb.mxu3 %v1669_v6 }
 0x1fc   :  { %1221 = vmatpush.bf16.msrb.mxu3 %v1641_v15 }
 0x25a   :  { %v723_v5 = vpop.f32.mrf.mxu1 }
 0x25b   :  { %v724_v11 = vadd.f32 %v1912_v51, %v723_v5  ;;  %v1854_v51 = vld [vmem:[%s2613_s11 + $0xc] sm:$0xf]  ;;  %v1880_v5 = vld [vmem:[%s2613_s11 + $0xd8] sm:$0xf0] }
 0x25c   :  { %v1577_v54 = vor.u32 %v1854_v51, %v1574_v52  ;;  %v1673_v7 = vor.u32 %v1880_v5, %v1672_v4 }
 0x25d   :  { %v727_v18 = vmax.f32 %v724_v11, 0.0  ;;  %v1637_v11 = vor.u32 %v1872_v9, %v1636_v8 }
 0x25e   :  { %1197 = vmatpush.bf16.msra.mxu1 %v1577_v54  ;;  %1233 = vmatpush.bf16.msrb.mxu0 %v1673_v7 }
 0x25f   :  { %v728_v24 = vpack.c.bf16 %v727_v18, %v727_v18  ;;  %v1865_v18 = vld [vmem:[%s2613_s11 + $0x60] sm:$0xf0]  ;;  %1208 = vmatpush.bf16.msra.mxu2 %v1637_v11  ;;  %v854_v11 = vperm.slane %v847_v41, 5 }
 0x260   :  { %v1609_v23 = vor.u32 %v1865_v18, %v1608_v17 }
 0x261   :  { %1561 = vmatmul.msk.bf16.vlgmr.msrb.gmra.mxu1 %vm671_vm1, %v728_v24  ;;  %v1613_v24 = vor.u32 %v1862_v19, %v1610_v20 }
 0x262   :  { %v725_v35 = vpop.f32.mrf.mxu1  ;;  %1234 = vmatpush.bf16.msrb.mxu0 %v1645_v16 }
 0x263   :  { %1209 = vmatpush.bf16.msra.mxu2 %v1609_v23  ;;  %1222 = vmatpush.bf16.msrb.mxu3 %v1613_v24  ;;  %v1913_v35 = vld [vmem:[%s2612_s10] ss:$0 sm:$0xff] }
 0x266   :  { %1235 = vmatpush.bf16.msrb.mxu0 %v1617_v25 }
 0x267   :  { %1210 = vmatpush.bf16.msra.mxu2 %v1581_v32  ;;  %1223 = vmatpush.bf16.msrb.mxu3 %v1585_v33 }
 0x26a   :  { %1236 = vmatpush.bf16.msrb.mxu0 %v1589_v34 }
 0x2de   :  { %v777_v36 = vpop.f32.mrf.mxu1 }
 0x2df   :  { %v778_v37 = vadd.f32 %v1913_v35, %v777_v36 }
 0x2e1   :  { %v781_v38 = vmax.f32 %v778_v37, 0.0 }
 0x2e3   :  { %v782_v39 = vpack.c.bf16 %v781_v38, %v781_v38 }
 0x2e5   :  { %1159 = vmatmul.bf16.vlgmr.msrb.gmra.mxu2 %v782_v39  ;;  %1172 = vmatmul.bf16.vlgmr.msra.gmra.mxu3 %v782_v39 }
 0x2e6   :  { %1185 = vmatmul.bf16.vlgmr.msra.gmra.mxu0 %v782_v39  ;;  %1198 = vmatmul.bf16.vlgmr.msra.gmra.mxu1 %v782_v39  ;;  %v779_v40 = vpop.f32.mrf.mxu1 }
 0x2f5   :  { %1211 = vmatmul.bf16.vlgmr.msra.gmra.mxu2 %v782_v39  ;;  %1224 = vmatmul.bf16.vlgmr.msrb.gmra.mxu3 %v782_v39 }
 0x2f6   :  { %1237 = vmatmul.bf16.vlgmr.msrb.gmra.mxu0 %v782_v39 }
 0x363   :  { %v1186_v44 = vpop.f32.mrf.mxu0  ;;  %v1199_v45 = vpop.f32.mrf.mxu1 }
 0x364   :  { %v1187_v46 = vadd.f32 %v1186_v44, %v851_v42  ;;  %v1200_v47 = vadd.f32 %v1199_v45, %v852_v43 }
 0x366   :  { %v1244_v50 = vsub.f32 0.0, %v1187_v46  ;;  %v1245_v51 = vsub.f32 0.0, %v1200_v47 }
 0x368   :  { %v1253_v52 = vmul.f32 1.442695, %v1244_v50  ;;  %v1255_v53 = vmul.f32 1.442695, %v1245_v51  ;;  %v1160_v54 = vpop.f32.mrf.mxu2  ;;  %v1173_v55 = vpop.f32.mrf.mxu3 }
 0x369   :  { %v1161_v56 = vadd.f32 %v1160_v54, %v849_v48  ;;  %v1174_v57 = vadd.f32 %v1173_v55, %v850_v49 }
 0x36a   :  { %1914 = vpow2.f32 %v1253_v52 }
 0x36b   :  { %1916 = vpow2.f32 %v1255_v53  ;;  %v1242_v58 = vsub.f32 0.0, %v1161_v56  ;;  %v1243_v59 = vsub.f32 0.0, %v1174_v57  ;;  %v1188_v60 = vpop.f32.mrf.mxu0  ;;  %v1201_v61 = vpop.f32.mrf.mxu1 }
 0x36d   :  { %v1249_v62 = vmul.f32 1.442695, %v1242_v58  ;;  %v1251_v63 = vmul.f32 1.442695, %v1243_v59 }
 0x36f   :  { %1918 = vpow2.f32 %v1249_v62 }
 0x370   :  { %v1915_v0 = vpop.eup %1914  ;;  %1920 = vpow2.f32 %v1251_v63  ;;  %v1162_v1 = vpop.f32.mrf.mxu2 }
 0x371   :  { %v1175_v2 = vpop.f32.mrf.mxu3  ;;  %v1917_v4 = vpop.eup %1916  ;;  %v1265_v5 = vadd.f32 1.0, %v1915_v0 }
 0x372   :  { %v1266_v6 = vadd.f32 1.0, %v1917_v4 }
 0x373   :  { %1922 = vrcp.f32 %v1265_v5  ;;  %v1238_v7 = vpop.f32.mrf.mxu0 }
 0x374   :  { %1924 = vrcp.f32 %v1266_v6  ;;  %v1239_v8 = vadd.f32 %v1238_v7, %v855_v3 }
 0x375   :  { %v1919_v9 = vpop.eup %1918 }
 0x376   :  { %v1921_v12 = vpop.eup %1920  ;;  %v1263_v13 = vadd.f32 1.0, %v1919_v9  ;;  %v1248_v14 = vsub.f32 0.0, %v1239_v8 }
 0x377   :  { %v1264_v15 = vadd.f32 1.0, %v1921_v12 }
 0x378   :  { %1926 = vrcp.f32 %v1263_v13  ;;  %v1261_v16 = vmul.f32 1.442695, %v1248_v14  ;;  %v1212_v17 = vpop.f32.mrf.mxu2 }
 0x379   :  { %v1225_v18 = vpop.f32.mrf.mxu3  ;;  %v1923_v19 = vpop.eup %1922  ;;  %1928 = vrcp.f32 %v1264_v15  ;;  %v1213_v20 = vadd.f32 %v1212_v17, %v853_v10 }
 0x37a   :  { %v1226_v21 = vadd.f32 %v1225_v18, %v854_v11  ;;  %v1925_v22 = vpop.eup %1924  ;;  %1930 = vpow2.f32 %v1261_v16 }
 0x37b   :  { %v1278_v23 = vpack.c.bf16 %v1925_v22, %v1923_v19  ;;  %v1246_v24 = vsub.f32 0.0, %v1213_v20  ;;  %v1240_v26 = vpop.f32.mrf.mxu0 }
 0x37c   :  { %v1247_v25 = vsub.f32 0.0, %v1226_v21 }
 0x37d   :  { %1282 = vst [vmem:[%s2615_s13 + $0x8] sm:$0xff] %v1278_v23  ;;  %v1257_v27 = vmul.f32 1.442695, %v1246_v24 }
 0x37e   :  { %v1259_v28 = vmul.f32 1.442695, %v1247_v25  ;;  %v1927_v29 = vpop.eup %1926 }
 0x37f   :  { %v1929_v30 = vpop.eup %1928  ;;  %1932 = vpow2.f32 %v1257_v27 }
 0x380   :  { %v1931_v31 = vpop.eup %1930  ;;  %v1277_v32 = vpack.c.bf16 %v1929_v30, %v1927_v29  ;;  %1934 = vpow2.f32 %v1259_v28  ;;  %v1214_v33 = vpop.f32.mrf.mxu2 }
 0x381   :  { %v1227_v34 = vpop.f32.mrf.mxu3  ;;  %v1269_v35 = vadd.f32 1.0, %v1931_v31 }
 0x382   :  { %1281 = vst [vmem:[%s2615_s13] sm:$0xff] %v1277_v32 }
 0x383   :  { %1936 = vrcp.f32 %v1269_v35 }
 0x385   :  { %v1933_v36 = vpop.eup %1932 }
 0x386   :  { %v1935_v37 = vpop.eup %1934  ;;  %v1267_v38 = vadd.f32 1.0, %v1933_v36 }
 0x387   :  { %v1268_v39 = vadd.f32 1.0, %v1935_v37 }
 0x388   :  { %1938 = vrcp.f32 %v1267_v38 }
 0x389   :  { %v1937_v40 = vpop.eup %1936  ;;  %1940 = vrcp.f32 %v1268_v39 }
 0x38a   :  { %v1280_v41 = vpack.c.bf16 %v1937_v40, %v1937_v40 }
 0x38c   :  { %1285 = vst.msk [vmem:[%s2615_s13 + $0x18] sm:$0xf] %vm1284_vm3, %v1280_v41 }
 0x38e   :  { %v1939_v42 = vpop.eup %1938 }
 0x38f   :  { %v1941_v43 = vpop.eup %1940 }
 0x390   :  { %v1279_v44 = vpack.c.bf16 %v1941_v43, %v1939_v42 }
 0x392   :  { %1283 = vst [vmem:[%s2615_s13 + $0x10] sm:$0xff] %v1279_v44 }

</bundles_post_ra>
